<compile_context>
chip_gen: v5e
topology: v5e:2x2
jax: 0.10.0
libtpu: 0.0.40
codegen_flags: <defaults>
</compile_context>

<pallas_src>
import functools

import jax
import jax.numpy as jnp
import numpy as np
from jax.experimental import pallas as pl
from jax.experimental.pallas import tpu as pltpu

_LANE = 128      # vreg lane width (last dim)
_SUBLANE = 8     # vreg sublane count (second-to-last dim, f32)


def _round_up(n, m):
    return (n + m - 1) // m * m


def _pad_to(a, shape):
    return jnp.pad(a, [(0, s - d) for d, s in zip(a.shape, shape)])


def _rnn_kernel(x_ref, w_ref, b_ref, out_ref):
    """Single invocation (no grid); everything resident in VMEM.

    x_ref   (T, Bp, P)  bf16  time-major, zero-padded input
    w_ref   (3, P, P)   bf16  [0]=W_ih^T, [1]=W_hh^T, [2]=W_fc^T (zero-padded)
    b_ref   (2, P)      f32   [0]=b_ih+b_hh, [1]=b_fc (zero-padded)
    out_ref (Bp, P)     f32   lane-dense logits slab (cols C..P-1 are garbage
                              bias-only values on padded rows; sliced outside)
    """
    T, Bp, P = x_ref.shape

    # Static first-axis slices of the coalesced refs are free views.
    w_ih = w_ref[0]                     # (P, P) bf16
    w_hh = w_ref[1]                     # (P, P) bf16, stays resident
    w_fc = w_ref[2]                     # (P, P) bf16
    b_rnn = b_ref[0:1, :]               # (1, P) f32  (b_ih + b_hh)
    b_fc = b_ref[1:2, :]                # (1, P) f32

    # --- 1) Input projection for ALL time steps as one big MXU matmul. ---
    # (T*Bp, P) = (64, 128) is (8,128)-tile aligned, so the reshape is a view.
    x_all = x_ref[...].reshape(T * Bp, P)                               # bf16
    xw = (jnp.dot(x_all, w_ih, preferred_element_type=jnp.float32)
          + b_rnn).reshape(T, Bp, P)                                    # f32, SSA (8 vregs)

    # --- 2) Serial recurrence: only h @ W_hh^T remains on the critical path.
    # Static Python unroll (T is small & static): xw[t] is a static vreg slice,
    # no VMEM scratch round-trip. Zero-padded W columns + zero-padded bias keep
    # the padded hidden lanes exactly 0.
    # TODO(synk): if the bundle dump shows Mosaic re-streaming the W_hh RHS each
    # step, switch to explicit pltpu.matmul_push_rhs / matmul_acc_lhs / matmul_pop
    # to keep W_hh staged in the MXU weight registers across the recurrence.
    h = jnp.zeros((Bp, P), jnp.float32)
    for t in range(T):
        pre = xw[t] + jnp.dot(h.astype(jnp.bfloat16), w_hh,
                              preferred_element_type=jnp.float32)
        h = jnp.tanh(pre)                                               # f32 (v5e: no bf16 EUP)

    # --- 3) Fused classifier head (runs exactly once). ---
    logits = jnp.dot(h.astype(jnp.bfloat16), w_fc,
                     preferred_element_type=jnp.float32) + b_fc
    out_ref[...] = logits.astype(out_ref.dtype)


def prepare_rnn_params(w_ih, w_hh, b_ih, b_hh, w_fc, b_fc):
    """One-time parameter prep (transpose, pad, cast, coalesce).

    PyTorch convention: w_ih (H, D), w_hh (H, H), b_ih (H,), b_hh (H,),
    w_fc (C, H), b_fc (C,).  Returns (w_packed (3,P,P) bf16, b_packed (2,P) f32, C).
    """
    H, D = w_ih.shape
    C = w_fc.shape[0]
    P = max(_round_up(D, _LANE), _round_up(H, _LANE), _round_up(C, _LANE))
    bf = jnp.bfloat16
    w_packed = jnp.stack([
        _pad_to(w_ih.T.astype(bf), (P, P)),    # x_t @ W_ih^T
        _pad_to(w_hh.T.astype(bf), (P, P)),    # h   @ W_hh^T
        _pad_to(w_fc.T.astype(bf), (P, P)),    # h_T @ W_fc^T
    ])
    b_packed = jnp.stack([
        _pad_to((b_ih + b_hh).astype(jnp.float32), (P,)),
        _pad_to(b_fc.astype(jnp.float32), (P,)),
    ])
    return w_packed, b_packed, C


@functools.partial(jax.jit, static_argnames=("num_classes",))
def rnn_apply(x, w_packed, b_packed, *, num_classes):
    """x: (B, T, D_in) f32.  w_packed/b_packed from prepare_rnn_params."""
    B, T, _ = x.shape
    P = w_packed.shape[-1]
    Bp = _round_up(B, _SUBLANE)

    # Per-call work on x only: time-major, zero-pad, bf16 cast (fuses under jit).
    x_p = _pad_to(jnp.transpose(x, (1, 0, 2)).astype(jnp.bfloat16), (T, Bp, P))

    vmem = pl.BlockSpec(memory_space=pltpu.MemorySpace.VMEM)
    out = pl.pallas_call(
        _rnn_kernel,
        out_shape=jax.ShapeDtypeStruct((Bp, P), jnp.float32),
        in_specs=[vmem, vmem, vmem],
        out_specs=vmem,
        compiler_params=pltpu.CompilerParams(vmem_limit_bytes=32 << 20),
    )(x_p, w_packed, b_packed)
    # TODO(synk): when Bp >= 16, add a leading "parallel" batch grid axis (chunk x
    # and out over batch) so v7x's two TensorCores each run an independent batch
    # slice of the (batch-parallel) recurrence; pure overhead at Bp=8.
    return out[:B, :num_classes]


def rnn_model_forward(x, w_ih, w_hh, b_ih, b_hh, w_fc, b_fc):
    """Convenience one-shot wrapper (steady-state callers should cache prepare)."""
    w_packed, b_packed, C = prepare_rnn_params(w_ih, w_hh, b_ih, b_hh, w_fc, b_fc)
    return rnn_apply(x, w_packed, b_packed, num_classes=C)


def _reference_forward_f32(x, w_ih, w_hh, b_ih, b_hh, w_fc, b_fc):
    """Pure-JAX f32 reference matching torch.nn.RNN(batch_first=True) + Linear."""
    B, T, _ = x.shape
    H = w_ih.shape[0]
    h = jnp.zeros((B, H), jnp.float32)
    for t in range(T):
        h = jnp.tanh(x[:, t, :] @ w_ih.T + b_ih + h @ w_hh.T + b_hh)
    return h @ w_fc.T + b_fc


def _reference_forward_bf16(x, w_ih, w_hh, b_ih, b_hh, w_fc, b_fc):
    """Same math with the kernel's precision recipe: bf16 matmul inputs, f32 accum."""
    bf = jnp.bfloat16
    B, T, _ = x.shape
    H = w_ih.shape[0]
    xw = jnp.einsum('btd,dh->bth', x.astype(bf), w_ih.T.astype(bf),
                    preferred_element_type=jnp.float32) + (b_ih + b_hh)
    h = jnp.zeros((B, H), jnp.float32)
    for t in range(T):
        h = jnp.tanh(xw[:, t, :] + jnp.dot(h.astype(bf), w_hh.T.astype(bf),
                                           preferred_element_type=jnp.float32))
    return jnp.dot(h.astype(bf), w_fc.T.astype(bf),
                   preferred_element_type=jnp.float32) + b_fc


if __name__ == "__main__":
    # Small, forward-consistent shapes: batch, seq, input_size, hidden_size, classes.
    B, T, D_in, H, C = 2, 8, 16, 32, 8

    key = jax.random.PRNGKey(0)
    k = jax.random.split(key, 8)
    bound = 1.0 / np.sqrt(H)   # PyTorch nn.RNN / nn.Linear default uniform bound
    x = jax.random.normal(k[0], (B, T, D_in), jnp.float32)
    w_ih = jax.random.uniform(k[1], (H, D_in), jnp.float32, -bound, bound)
    w_hh = jax.random.uniform(k[2], (H, H), jnp.float32, -bound, bound)
    b_ih = jax.random.uniform(k[3], (H,), jnp.float32, -bound, bound)
    b_hh = jax.random.uniform(k[4], (H,), jnp.float32, -bound, bound)
    w_fc = jax.random.uniform(k[5], (C, H), jnp.float32, -bound, bound)
    b_fc = jax.random.uniform(k[6], (C,), jnp.float32, -bound, bound)

    # Prepare parameters once (hoisted out of the per-call path), then run.
    w_packed, b_packed, num_classes = prepare_rnn_params(
        w_ih, w_hh, b_ih, b_hh, w_fc, b_fc)
    out = rnn_apply(x, w_packed, b_packed, num_classes=num_classes)
    out = jax.block_until_ready(out)

    # Structural check against a reference using the same precision recipe (tight).
    ref_bf16 = _reference_forward_bf16(x, w_ih, w_hh, b_ih, b_hh, w_fc, b_fc)
    np.testing.assert_allclose(np.asarray(out), np.asarray(ref_bf16),
                               rtol=5e-3, atol=5e-3)
    # Module-semantics check against full-f32 math (bf16 MXU inputs -> loose tol).
    # NOTE: the per-step bf16 re-quantization of h compounds with T; keep the
    # recurrence matmul input f32 if T scales and accuracy vs f32 PyTorch matters.
    ref_f32 = _reference_forward_f32(x, w_ih, w_hh, b_ih, b_hh, w_fc, b_fc)
    np.testing.assert_allclose(np.asarray(out), np.asarray(ref_f32),
                               rtol=5e-2, atol=5e-2)

    print("KERNEL_OK")
</pallas_src>

<mosaic_0001>
module attributes {stable_mosaic.version = 11 : i64} {
  func.func @_rnn_kernel(%arg0: memref<8x8x128xbf16, #tpu.memory_space<vmem>>, %arg1: memref<3x128x128xbf16, #tpu.memory_space<vmem>>, %arg2: memref<2x128xf32, #tpu.memory_space<vmem>>, %arg3: memref<8x128xf32, #tpu.memory_space<vmem>>) attributes {dimension_semantics = [], scalar_prefetch = 0 : i64, scratch_operands = 0 : i64, tpu.core_type = #tpu.core_type<tc>} {
    %c0 = arith.constant 0 : index
    %c0_0 = arith.constant 0 : index
    %c0_1 = arith.constant 0 : index
    %0 = vector.load %arg1[%c0, %c0_0, %c0_1] : memref<3x128x128xbf16, #tpu.memory_space<vmem>>, vector<1x128x128xbf16>
    %1 = vector.shape_cast %0 : vector<1x128x128xbf16> to vector<128x128xbf16>
    %c1 = arith.constant 1 : index
    %c0_2 = arith.constant 0 : index
    %c0_3 = arith.constant 0 : index
    %2 = vector.load %arg1[%c1, %c0_2, %c0_3] : memref<3x128x128xbf16, #tpu.memory_space<vmem>>, vector<1x128x128xbf16>
    %3 = vector.shape_cast %2 : vector<1x128x128xbf16> to vector<128x128xbf16>
    %c2 = arith.constant 2 : index
    %c0_4 = arith.constant 0 : index
    %c0_5 = arith.constant 0 : index
    %4 = vector.load %arg1[%c2, %c0_4, %c0_5] : memref<3x128x128xbf16, #tpu.memory_space<vmem>>, vector<1x128x128xbf16>
    %5 = vector.shape_cast %4 : vector<1x128x128xbf16> to vector<128x128xbf16>
    %c0_6 = arith.constant 0 : index
    %c0_7 = arith.constant 0 : index
    %6 = vector.load %arg2[%c0_6, %c0_7] : memref<2x128xf32, #tpu.memory_space<vmem>>, vector<1x128xf32>
    %c1_8 = arith.constant 1 : index
    %c0_9 = arith.constant 0 : index
    %7 = vector.load %arg2[%c1_8, %c0_9] : memref<2x128xf32, #tpu.memory_space<vmem>>, vector<1x128xf32>
    %c0_10 = arith.constant 0 : index
    %c0_11 = arith.constant 0 : index
    %c0_12 = arith.constant 0 : index
    %8 = vector.load %arg0[%c0_10, %c0_11, %c0_12] : memref<8x8x128xbf16, #tpu.memory_space<vmem>>, vector<8x8x128xbf16>
    %9 = vector.shape_cast %8 : vector<8x8x128xbf16> to vector<64x128xbf16>
    %cst = arith.constant dense<0.000000e+00> : vector<64x128xf32>
    %10 = tpu.matmul %9, %1, %cst {dimension_numbers = #tpu.dot_dimension_numbers<[1], [0], [0], [1], [0, 0, 1, 1], [], []>} : vector<64x128xbf16>, vector<128x128xbf16>, vector<64x128xf32> -> vector<64x128xf32>
    %11 = vector.broadcast %6 : vector<1x128xf32> to vector<64x128xf32>
    %12 = arith.addf %10, %11 : vector<64x128xf32>
    %13 = vector.shape_cast %12 : vector<64x128xf32> to vector<8x8x128xf32>
    %cst_13 = arith.constant 0.000000e+00 : f32
    %14 = vector.broadcast %cst_13 : f32 to vector<8x128xf32>
    %15 = vector.extract_strided_slice %13 {offsets = [0, 0, 0], sizes = [1, 8, 128], strides = [1, 1, 1]} : vector<8x8x128xf32> to vector<1x8x128xf32>
    %16 = vector.shape_cast %15 : vector<1x8x128xf32> to vector<8x128xf32>
    %17 = arith.truncf %14 : vector<8x128xf32> to vector<8x128xbf16>
    %cst_14 = arith.constant dense<0.000000e+00> : vector<8x128xf32>
    %18 = tpu.matmul %17, %3, %cst_14 {dimension_numbers = #tpu.dot_dimension_numbers<[1], [0], [0], [1], [0, 0, 1, 1], [], []>} : vector<8x128xbf16>, vector<128x128xbf16>, vector<8x128xf32> -> vector<8x128xf32>
    %19 = arith.addf %16, %18 : vector<8x128xf32>
    %20 = math.tanh %19 : vector<8x128xf32>
    %21 = vector.extract_strided_slice %13 {offsets = [1, 0, 0], sizes = [1, 8, 128], strides = [1, 1, 1]} : vector<8x8x128xf32> to vector<1x8x128xf32>
    %22 = vector.shape_cast %21 : vector<1x8x128xf32> to vector<8x128xf32>
    %23 = arith.truncf %20 : vector<8x128xf32> to vector<8x128xbf16>
    %cst_15 = arith.constant dense<0.000000e+00> : vector<8x128xf32>
    %24 = tpu.matmul %23, %3, %cst_15 {dimension_numbers = #tpu.dot_dimension_numbers<[1], [0], [0], [1], [0, 0, 1, 1], [], []>} : vector<8x128xbf16>, vector<128x128xbf16>, vector<8x128xf32> -> vector<8x128xf32>
    %25 = arith.addf %22, %24 : vector<8x128xf32>
    %26 = math.tanh %25 : vector<8x128xf32>
    %27 = vector.extract_strided_slice %13 {offsets = [2, 0, 0], sizes = [1, 8, 128], strides = [1, 1, 1]} : vector<8x8x128xf32> to vector<1x8x128xf32>
    %28 = vector.shape_cast %27 : vector<1x8x128xf32> to vector<8x128xf32>
    %29 = arith.truncf %26 : vector<8x128xf32> to vector<8x128xbf16>
    %cst_16 = arith.constant dense<0.000000e+00> : vector<8x128xf32>
    %30 = tpu.matmul %29, %3, %cst_16 {dimension_numbers = #tpu.dot_dimension_numbers<[1], [0], [0], [1], [0, 0, 1, 1], [], []>} : vector<8x128xbf16>, vector<128x128xbf16>, vector<8x128xf32> -> vector<8x128xf32>
    %31 = arith.addf %28, %30 : vector<8x128xf32>
    %32 = math.tanh %31 : vector<8x128xf32>
    %33 = vector.extract_strided_slice %13 {offsets = [3, 0, 0], sizes = [1, 8, 128], strides = [1, 1, 1]} : vector<8x8x128xf32> to vector<1x8x128xf32>
    %34 = vector.shape_cast %33 : vector<1x8x128xf32> to vector<8x128xf32>
    %35 = arith.truncf %32 : vector<8x128xf32> to vector<8x128xbf16>
    %cst_17 = arith.constant dense<0.000000e+00> : vector<8x128xf32>
    %36 = tpu.matmul %35, %3, %cst_17 {dimension_numbers = #tpu.dot_dimension_numbers<[1], [0], [0], [1], [0, 0, 1, 1], [], []>} : vector<8x128xbf16>, vector<128x128xbf16>, vector<8x128xf32> -> vector<8x128xf32>
    %37 = arith.addf %34, %36 : vector<8x128xf32>
    %38 = math.tanh %37 : vector<8x128xf32>
    %39 = vector.extract_strided_slice %13 {offsets = [4, 0, 0], sizes = [1, 8, 128], strides = [1, 1, 1]} : vector<8x8x128xf32> to vector<1x8x128xf32>
    %40 = vector.shape_cast %39 : vector<1x8x128xf32> to vector<8x128xf32>
    %41 = arith.truncf %38 : vector<8x128xf32> to vector<8x128xbf16>
    %cst_18 = arith.constant dense<0.000000e+00> : vector<8x128xf32>
    %42 = tpu.matmul %41, %3, %cst_18 {dimension_numbers = #tpu.dot_dimension_numbers<[1], [0], [0], [1], [0, 0, 1, 1], [], []>} : vector<8x128xbf16>, vector<128x128xbf16>, vector<8x128xf32> -> vector<8x128xf32>
    %43 = arith.addf %40, %42 : vector<8x128xf32>
    %44 = math.tanh %43 : vector<8x128xf32>
    %45 = vector.extract_strided_slice %13 {offsets = [5, 0, 0], sizes = [1, 8, 128], strides = [1, 1, 1]} : vector<8x8x128xf32> to vector<1x8x128xf32>
    %46 = vector.shape_cast %45 : vector<1x8x128xf32> to vector<8x128xf32>
    %47 = arith.truncf %44 : vector<8x128xf32> to vector<8x128xbf16>
    %cst_19 = arith.constant dense<0.000000e+00> : vector<8x128xf32>
    %48 = tpu.matmul %47, %3, %cst_19 {dimension_numbers = #tpu.dot_dimension_numbers<[1], [0], [0], [1], [0, 0, 1, 1], [], []>} : vector<8x128xbf16>, vector<128x128xbf16>, vector<8x128xf32> -> vector<8x128xf32>
    %49 = arith.addf %46, %48 : vector<8x128xf32>
    %50 = math.tanh %49 : vector<8x128xf32>
    %51 = vector.extract_strided_slice %13 {offsets = [6, 0, 0], sizes = [1, 8, 128], strides = [1, 1, 1]} : vector<8x8x128xf32> to vector<1x8x128xf32>
    %52 = vector.shape_cast %51 : vector<1x8x128xf32> to vector<8x128xf32>
    %53 = arith.truncf %50 : vector<8x128xf32> to vector<8x128xbf16>
    %cst_20 = arith.constant dense<0.000000e+00> : vector<8x128xf32>
    %54 = tpu.matmul %53, %3, %cst_20 {dimension_numbers = #tpu.dot_dimension_numbers<[1], [0], [0], [1], [0, 0, 1, 1], [], []>} : vector<8x128xbf16>, vector<128x128xbf16>, vector<8x128xf32> -> vector<8x128xf32>
    %55 = arith.addf %52, %54 : vector<8x128xf32>
    %56 = math.tanh %55 : vector<8x128xf32>
    %57 = vector.extract_strided_slice %13 {offsets = [7, 0, 0], sizes = [1, 8, 128], strides = [1, 1, 1]} : vector<8x8x128xf32> to vector<1x8x128xf32>
    %58 = vector.shape_cast %57 : vector<1x8x128xf32> to vector<8x128xf32>
    %59 = arith.truncf %56 : vector<8x128xf32> to vector<8x128xbf16>
    %cst_21 = arith.constant dense<0.000000e+00> : vector<8x128xf32>
    %60 = tpu.matmul %59, %3, %cst_21 {dimension_numbers = #tpu.dot_dimension_numbers<[1], [0], [0], [1], [0, 0, 1, 1], [], []>} : vector<8x128xbf16>, vector<128x128xbf16>, vector<8x128xf32> -> vector<8x128xf32>
    %61 = arith.addf %58, %60 : vector<8x128xf32>
    %62 = math.tanh %61 : vector<8x128xf32>
    %63 = arith.truncf %62 : vector<8x128xf32> to vector<8x128xbf16>
    %cst_22 = arith.constant dense<0.000000e+00> : vector<8x128xf32>
    %64 = tpu.matmul %63, %5, %cst_22 {dimension_numbers = #tpu.dot_dimension_numbers<[1], [0], [0], [1], [0, 0, 1, 1], [], []>} : vector<8x128xbf16>, vector<128x128xbf16>, vector<8x128xf32> -> vector<8x128xf32>
    %65 = vector.broadcast %7 : vector<1x128xf32> to vector<8x128xf32>
    %66 = arith.addf %64, %65 : vector<8x128xf32>
    %c0_23 = arith.constant 0 : index
    %c0_24 = arith.constant 0 : index
    %67 = vector.load %arg3[%c0_23, %c0_24] : memref<8x128xf32, #tpu.memory_space<vmem>>, vector<8x128xf32>
    tpu.vector_store %arg3[%c0_23, %c0_24], %66 {strides = array<i32>} : memref<8x128xf32, #tpu.memory_space<vmem>>, vector<8x128xf32>,
    return
  }
}

</mosaic_0001>

<bundles_post_ra>
// kernel: rnn_apply.1
= control target key start
LH: loop header
LB: loop body
LE: loop exit
PB: predicated region body
PF: predicated region fallthrough
CT: control target
= control target key end

     0   :  { %8 = vsyncpa [#allocation3], 0  ;;  %s625_s15 = smov [#allocation2]   ;;  %s626_s17 = smov 64   ;;  %s733_s0 = inlined_call_operand.vmem [shape: bf16[8,8,128], index: 0, kind: input, shape index: {}]   ;;  %s734_s1 = inlined_call_operand.hbm [shape: bf16[3,128,128], index: 1, kind: input, shape index: {}]   ;;  %s735_s2 = inlined_call_operand.vmem [shape: f32[2,128], index: 2, kind: input, shape index: {}]   ;;  %s736_s3 = inlined_call_operand.vmem [shape: f32[8,128], index: 3, kind: output, shape index: {}]  }
   0x1   :  { %s15_s14 = sshll.u32 %s734_s1, 4  ;;  %s17_s16 = sshll.u32 %s625_s15, 4  ;;  %s16_s14 = int_to_ptr.hbm [resolvable:$true] %s15_s14  ;;  %s18_s16 = int_to_ptr.vmem [resolvable:$true] %s17_s16 }
   0x2   :  { %s627_s18 = smov 4  }
   0x3   :  { %23 = dma.hbm_to_vmem [thread:$0]  %s16_s14, 3072, %s18_s16, [#allocation3], %s626_s17, %s626_s17, %s627_s18  }
   0x4   :  { %623 = dma.done.wait [#allocation3], 3072  }
   0x5   :  { %624 = vsyncadd [#allocation3], 4294964224  ;;  %v556_v0 = vld [vmem:[#allocation2 + $0x38] sm:$0xff]  ;;  %v555_v2 = vld [vmem:[#allocation2 + $0x30] sm:$0xff]  ;;  %v628_v17 = vmov 0  }
   0x6   :  { %v652_v1 = vld [vmem:[#allocation2 + $0x78] sm:$0xff]  ;;  %164 = vmatpush.bf16.msra.mxu0 %v556_v0  ;;  %v655_v3 = vld [vmem:[#allocation2 + $0x70] sm:$0xff]  ;;  %v554_v4 = vld [vmem:[#allocation2 + $0x28] sm:$0xff] }
   0x7   :  { %241 = vmatpush.bf16.msra.mxu1 %v652_v1  ;;  %257 = vmatpush.bf16.msra.mxu2 %v652_v1  ;;  %v660_v5 = vld [vmem:[#allocation2 + $0x68] sm:$0xff]  ;;  %v553_v6 = vld [vmem:[#allocation2 + $0x20] sm:$0xff]  ;;  %v552_v8 = vld [vmem:[#allocation2 + $0x18] sm:$0xff] }
   0x8   :  { %273 = vmatpush.bf16.msra.mxu3 %v652_v1  ;;  %v665_v7 = vld [vmem:[#allocation2 + $0x60] sm:$0xff]  ;;  %v670_v9 = vld [vmem:[#allocation2 + $0x58] sm:$0xff]  ;;  %v551_v10 = vld [vmem:[#allocation2 + $0x10] sm:$0xff] }
   0x9   :  { %v559_v11 = vld [vmem:[#allocation2 + $0x50] sm:$0xff]  ;;  %v550_v12 = vld [vmem:[#allocation2 + $0x8] sm:$0xff]  ;;  %v549_v14 = vld [vmem:[#allocation2] sm:$0xff] }
   0xa   :  { %165 = vmatpush.bf16.msra.mxu0 %v555_v2  ;;  %v558_v13 = vld [vmem:[#allocation2 + $0x48] sm:$0xff]  ;;  %v557_v15 = vld [vmem:[#allocation2 + $0x40] sm:$0xff]  ;;  %v575_v41 = vld [vmem:[%s733_s0 + $0x10] sm:$0xff] }
   0xb   :  { %242 = vmatpush.bf16.msra.mxu1 %v655_v3  ;;  %258 = vmatpush.bf16.msra.mxu2 %v655_v3  ;;  %v573_v16 = vld [vmem:[%s733_s0] sm:$0xff]  ;;  %v574_v26 = vld [vmem:[%s733_s0 + $0x8] sm:$0xff]  ;;  %v576_v49 = vld [vmem:[%s733_s0 + $0x18] sm:$0xff] }
   0xc   :  { %274 = vmatpush.bf16.msra.mxu3 %v655_v3  ;;  %v708_v18 = vld [vmem:[%s735_s2] ss:$0 sm:$0xff]  ;;  %v572_v0 = vld [vmem:[#allocation2 + $0xb8] sm:$0xff]  ;;  %v571_v2 = vld [vmem:[#allocation2 + $0xb0] sm:$0xff] }
   0xe   :  { %166 = vmatpush.bf16.msra.mxu0 %v554_v4  ;;  %v569_v4 = vld [vmem:[#allocation2 + $0xa0] sm:$0xff] }
   0xf   :  { %243 = vmatpush.bf16.msra.mxu1 %v660_v5  ;;  %259 = vmatpush.bf16.msra.mxu2 %v660_v5 }
  0x10   :  { %275 = vmatpush.bf16.msra.mxu3 %v660_v5 }
  0x12   :  { %167 = vmatpush.bf16.msra.mxu0 %v553_v6  ;;  %v568_v6 = vld [vmem:[#allocation2 + $0x98] sm:$0xff] }
  0x13   :  { %244 = vmatpush.bf16.msra.mxu1 %v665_v7  ;;  %260 = vmatpush.bf16.msra.mxu2 %v665_v7 }
  0x14   :  { %276 = vmatpush.bf16.msra.mxu3 %v665_v7 }
  0x16   :  { %168 = vmatpush.bf16.msra.mxu0 %v552_v8 }
  0x17   :  { %245 = vmatpush.bf16.msra.mxu1 %v670_v9  ;;  %261 = vmatpush.bf16.msra.mxu2 %v670_v9 }
  0x18   :  { %277 = vmatpush.bf16.msra.mxu3 %v670_v9 }
  0x1a   :  { %169 = vmatpush.bf16.msra.mxu0 %v551_v10 }
  0x1b   :  { %246 = vmatpush.bf16.msra.mxu1 %v559_v11  ;;  %262 = vmatpush.bf16.msra.mxu2 %v559_v11 }
  0x1c   :  { %278 = vmatpush.bf16.msra.mxu3 %v559_v11 }
  0x1e   :  { %170 = vmatpush.bf16.msra.mxu0 %v550_v12 }
  0x1f   :  { %247 = vmatpush.bf16.msra.mxu1 %v558_v13  ;;  %263 = vmatpush.bf16.msra.mxu2 %v558_v13 }
  0x20   :  { %279 = vmatpush.bf16.msra.mxu3 %v558_v13 }
  0x22   :  { %171 = vmatpush.bf16.msra.mxu0 %v549_v14  ;;  %v566_v14 = vld [vmem:[#allocation2 + $0x88] sm:$0xff] }
  0x23   :  { %248 = vmatpush.bf16.msra.mxu1 %v557_v15  ;;  %264 = vmatpush.bf16.msra.mxu2 %v557_v15 }
  0x24   :  { %280 = vmatpush.bf16.msra.mxu3 %v557_v15 }
  0x25   :  { %172 = vmatmul.bf16.vlgmr.msra.gmra.mxu0 %v573_v16 }
  0x26   :  { %249 = vmatmul.bf16.vlgmr.msra.gmra.mxu1 %v628_v17  ;;  %337 = vmatpush.bf16.msrb.mxu0 %v652_v1 }
  0x27   :  { %289 = vmatpush.bf16.msrb.mxu1 %v652_v1  ;;  %305 = vmatpush.bf16.msrb.mxu2 %v652_v1 }
  0x28   :  { %321 = vmatpush.bf16.msrb.mxu3 %v652_v1 }
  0x2a   :  { %338 = vmatpush.bf16.msrb.mxu0 %v655_v3 }
  0x2b   :  { %290 = vmatpush.bf16.msrb.mxu1 %v655_v3  ;;  %306 = vmatpush.bf16.msrb.mxu2 %v655_v3 }
  0x2c   :  { %322 = vmatpush.bf16.msrb.mxu3 %v655_v3 }
  0x2e   :  { %339 = vmatpush.bf16.msrb.mxu0 %v660_v5 }
  0x2f   :  { %291 = vmatpush.bf16.msrb.mxu1 %v660_v5  ;;  %307 = vmatpush.bf16.msrb.mxu2 %v660_v5 }
  0x30   :  { %323 = vmatpush.bf16.msrb.mxu3 %v660_v5 }
  0x32   :  { %340 = vmatpush.bf16.msrb.mxu0 %v665_v7 }
  0x33   :  { %292 = vmatpush.bf16.msrb.mxu1 %v665_v7  ;;  %308 = vmatpush.bf16.msrb.mxu2 %v665_v7 }
  0x34   :  { %324 = vmatpush.bf16.msrb.mxu3 %v665_v7 }
  0x35   :  { %177 = vmatmul.bf16.gmra.mxu0 %v574_v26 }
  0x36   :  { %341 = vmatpush.bf16.msrb.mxu0 %v670_v9 }
  0x37   :  { %293 = vmatpush.bf16.msrb.mxu1 %v670_v9  ;;  %309 = vmatpush.bf16.msrb.mxu2 %v670_v9 }
  0x38   :  { %325 = vmatpush.bf16.msrb.mxu3 %v670_v9 }
  0x3a   :  { %342 = vmatpush.bf16.msrb.mxu0 %v559_v11 }
  0x3b   :  { %294 = vmatpush.bf16.msrb.mxu1 %v559_v11  ;;  %310 = vmatpush.bf16.msrb.mxu2 %v559_v11 }
  0x3c   :  { %326 = vmatpush.bf16.msrb.mxu3 %v559_v11 }
  0x3e   :  { %343 = vmatpush.bf16.msrb.mxu0 %v558_v13 }
  0x3f   :  { %295 = vmatpush.bf16.msrb.mxu1 %v558_v13  ;;  %311 = vmatpush.bf16.msrb.mxu2 %v558_v13 }
  0x40   :  { %327 = vmatpush.bf16.msrb.mxu3 %v558_v13 }
  0x42   :  { %344 = vmatpush.bf16.msrb.mxu0 %v557_v15 }
  0x43   :  { %296 = vmatpush.bf16.msrb.mxu1 %v557_v15  ;;  %312 = vmatpush.bf16.msrb.mxu2 %v557_v15 }
  0x44   :  { %328 = vmatpush.bf16.msrb.mxu3 %v557_v15 }
  0x45   :  { %182 = vmatmul.bf16.gmra.mxu0 %v575_v41 }
  0x47   :  { %353 = vmatpush.bf16.msra.mxu1 %v652_v1 }
  0x4b   :  { %354 = vmatpush.bf16.msra.mxu1 %v655_v3  ;;  %v570_v3 = vld [vmem:[#allocation2 + $0xa8] sm:$0xff] }
  0x4f   :  { %355 = vmatpush.bf16.msra.mxu1 %v660_v5 }
  0x53   :  { %356 = vmatpush.bf16.msra.mxu1 %v665_v7 }
  0x55   :  { %187 = vmatmul.bf16.gmra.mxu0 %v576_v49 }
  0x57   :  { %357 = vmatpush.bf16.msra.mxu1 %v670_v9 }
  0x5b   :  { %358 = vmatpush.bf16.msra.mxu1 %v559_v11 }
  0x5f   :  { %359 = vmatpush.bf16.msra.mxu1 %v558_v13  ;;  %v567_v13 = vld [vmem:[#allocation2 + $0x90] sm:$0xff] }
  0x63   :  { %360 = vmatpush.bf16.msra.mxu1 %v557_v15  ;;  %v565_v15 = vld [vmem:[#allocation2 + $0x80] sm:$0xff] }
  0xa2   :  { %v173_v19 = vpop.f32.mrf.mxu0 }
  0xa3   :  { %v250_v20 = vpop.f32.mrf.mxu1  ;;  %v174_v21 = vadd.f32 %v708_v18, %v173_v19 }
  0xa5   :  { %v254_v22 = vadd.f32 %v250_v20, %v174_v21 }
  0xa7   :  { %583 = vtanh.f32 %v254_v22 }
  0xaa   :  { %v175_v27 = vpop.f32.mrf.mxu0 }
  0xab   :  { %v252_v23 = vpop.f32.mrf.mxu1  ;;  %v176_v28 = vadd.f32 %v708_v18, %v175_v27 }
  0xac   :  { %v582_v23 = vld [vmem:[%s735_s2 + $0x1] ss:$0 sm:$0xff] }
  0xad   :  { %v584_v24 = vpop.eup %583 }
  0xae   :  { %v256_v25 = vpack.c.bf16 %v584_v24, %v584_v24 }
  0xb0   :  { %265 = vmatmul.bf16.vlgmr.msra.gmra.mxu2 %v256_v25 }
  0xb1   :  { %418 = vmatpush.bf16.msra.mxu2 %v572_v0 }
  0xb2   :  { %v178_v34 = vpop.f32.mrf.mxu0 }
  0xb3   :  { %v179_v35 = vadd.f32 %v708_v18, %v178_v34 }
  0xb5   :  { %419 = vmatpush.bf16.msra.mxu2 %v571_v2 }
  0xb9   :  { %420 = vmatpush.bf16.msra.mxu2 %v570_v3 }
  0xba   :  { %v180_v42 = vpop.f32.mrf.mxu0 }
  0xbb   :  { %v181_v43 = vadd.f32 %v708_v18, %v180_v42 }
  0xbd   :  { %421 = vmatpush.bf16.msra.mxu2 %v569_v4 }
  0xc1   :  { %422 = vmatpush.bf16.msra.mxu2 %v568_v6 }
  0xc2   :  { %v183_v50 = vpop.f32.mrf.mxu0 }
  0xc3   :  { %v184_v51 = vadd.f32 %v708_v18, %v183_v50 }
  0xc5   :  { %423 = vmatpush.bf16.msra.mxu2 %v567_v13 }
  0xc9   :  { %424 = vmatpush.bf16.msra.mxu2 %v566_v14 }
  0xca   :  { %v185_v57 = vpop.f32.mrf.mxu0 }
  0xcb   :  { %v186_v58 = vadd.f32 %v708_v18, %v185_v57 }
  0xcd   :  { %425 = vmatpush.bf16.msra.mxu2 %v565_v15 }
  0xd2   :  { %v188_v1 = vpop.f32.mrf.mxu0 }
  0xd3   :  { %v189_v7 = vadd.f32 %v708_v18, %v188_v1 }
  0xda   :  { %v190_v5 = vpop.f32.mrf.mxu0 }
  0xdb   :  { %v191_v16 = vadd.f32 %v708_v18, %v190_v5 }
 0x133   :  { %v266_v29 = vpop.f32.mrf.mxu2 }
 0x134   :  { %v270_v30 = vadd.f32 %v266_v29, %v176_v28 }
 0x136   :  { %585 = vtanh.f32 %v270_v30 }
 0x13b   :  { %v268_v31 = vpop.f32.mrf.mxu2 }
 0x13c   :  { %v586_v32 = vpop.eup %585 }
 0x13d   :  { %v272_v33 = vpack.c.bf16 %v586_v32, %v586_v32 }
 0x13f   :  { %281 = vmatmul.bf16.vlgmr.msra.gmra.mxu3 %v272_v33 }
 0x1c2   :  { %v282_v36 = vpop.f32.mrf.mxu3 }
 0x1c3   :  { %v286_v37 = vadd.f32 %v282_v36, %v179_v35 }
 0x1c5   :  { %587 = vtanh.f32 %v286_v37 }
 0x1ca   :  { %v284_v38 = vpop.f32.mrf.mxu3 }
 0x1cb   :  { %v588_v39 = vpop.eup %587 }
 0x1cc   :  { %v288_v40 = vpack.c.bf16 %v588_v39, %v588_v39 }
 0x1ce   :  { %297 = vmatmul.bf16.vlgmr.msrb.gmra.mxu1 %v288_v40 }
 0x24b   :  { %v298_v44 = vpop.f32.mrf.mxu1 }
 0x24c   :  { %v302_v45 = vadd.f32 %v298_v44, %v181_v43 }
 0x24e   :  { %589 = vtanh.f32 %v302_v45 }
 0x253   :  { %v300_v46 = vpop.f32.mrf.mxu1 }
 0x254   :  { %v590_v47 = vpop.eup %589 }
 0x255   :  { %v304_v48 = vpack.c.bf16 %v590_v47, %v590_v47 }
 0x257   :  { %313 = vmatmul.bf16.vlgmr.msrb.gmra.mxu2 %v304_v48 }
 0x2da   :  { %v314_v52 = vpop.f32.mrf.mxu2 }
 0x2db   :  { %v318_v53 = vadd.f32 %v314_v52, %v184_v51 }
 0x2dd   :  { %591 = vtanh.f32 %v318_v53 }
 0x2e2   :  { %v316_v54 = vpop.f32.mrf.mxu2 }
 0x2e3   :  { %v592_v55 = vpop.eup %591 }
 0x2e4   :  { %v320_v56 = vpack.c.bf16 %v592_v55, %v592_v55 }
 0x2e6   :  { %329 = vmatmul.bf16.vlgmr.msrb.gmra.mxu3 %v320_v56 }
 0x369   :  { %v330_v59 = vpop.f32.mrf.mxu3 }
 0x36a   :  { %v334_v60 = vadd.f32 %v330_v59, %v186_v58 }
 0x36c   :  { %593 = vtanh.f32 %v334_v60 }
 0x371   :  { %v332_v61 = vpop.f32.mrf.mxu3 }
 0x372   :  { %v594_v62 = vpop.eup %593 }
 0x373   :  { %v336_v63 = vpack.c.bf16 %v594_v62, %v594_v62 }
 0x375   :  { %345 = vmatmul.bf16.vlgmr.msrb.gmra.mxu0 %v336_v63 }
 0x3f2   :  { %v346_v8 = vpop.f32.mrf.mxu0 }
 0x3f3   :  { %v350_v9 = vadd.f32 %v346_v8, %v189_v7 }
 0x3f5   :  { %595 = vtanh.f32 %v350_v9 }
 0x3fa   :  { %v348_v10 = vpop.f32.mrf.mxu0 }
 0x3fb   :  { %v596_v11 = vpop.eup %595 }
 0x3fc   :  { %v352_v12 = vpack.c.bf16 %v596_v11, %v596_v11 }
 0x3fe   :  { %361 = vmatmul.bf16.vlgmr.msra.gmra.mxu1 %v352_v12 }
 0x47b   :  { %v362_v17 = vpop.f32.mrf.mxu1 }
 0x47c   :  { %v366_v19 = vadd.f32 %v362_v17, %v191_v16 }
 0x47e   :  { %597 = vtanh.f32 %v366_v19 }
 0x483   :  { %v364_v20 = vpop.f32.mrf.mxu1 }
 0x484   :  { %v598_v21 = vpop.eup %597 }
 0x485   :  { %v368_v22 = vpack.c.bf16 %v598_v21, %v598_v21 }
 0x487   :  { %426 = vmatmul.bf16.vlgmr.msra.gmra.mxu2 %v368_v22 }
 0x50a   :  { %v427_v24 = vpop.f32.mrf.mxu2 }
 0x50b   :  { %v428_v25 = vadd.f32 %v582_v23, %v427_v24 }
 0x50d   :  { %431 = vst [vmem:[%s736_s3] sm:$0xff] %v428_v25 }
 0x512   :  { %v429_v26 = vpop.f32.mrf.mxu2 }
 0x513   :  { %436 = vsyncpa [#allocation3], 1 }

</bundles_post_ra>
